<compile_context>
chip_gen: v7x
topology: tpu7x:2x2x1
jax: 0.10.0
libtpu: 0.0.40
codegen_flags: <defaults>
</compile_context>

<pallas_src>
import jax
import jax.numpy as jnp
from jax.experimental import pallas as pl
from jax.experimental.pallas import tpu as pltpu

LANE = 128  # TPU lane width


def _round_up(n, m):
    return ((n + m - 1) // m) * m


def _disc_kernel(x_ref,
                 w1_ref, b1_ref,
                 w2_ref, b2_ref,
                 w3_ref, b3_ref,
                 w4_ref, b4_ref,
                 out_ref):
    x = x_ref[...]
    # Layer 1: Linear(input_dim -> 128 padded [true 100]) + ReLU
    h1 = jnp.dot(x, w1_ref[...], preferred_element_type=jnp.float32) + b1_ref[...]
    h1 = jnp.maximum(h1, 0.0)
    # Layer 2: Linear(128 padded -> 128) + ReLU
    h2 = jnp.dot(h1, w2_ref[...], preferred_element_type=jnp.float32) + b2_ref[...]
    h2 = jnp.maximum(h2, 0.0)
    # Layer 3: Linear(128 -> 128 padded [true 64]) + ReLU
    h3 = jnp.dot(h2, w3_ref[...], preferred_element_type=jnp.float32) + b3_ref[...]
    h3 = jnp.maximum(h3, 0.0)
    # Layer 4: Linear(128 padded [true 64] -> 1) + sigmoid
    z = jnp.dot(h3, w4_ref[...], preferred_element_type=jnp.float32) + b4_ref[...]
    out_ref[...] = pl.reciprocal(1.0 + jnp.exp(-z), approx=False)


def discriminator_forward(x, params, tile_b=512):
    """x: (B, input_dim) float32; params: dict of (in,out) weights and (1,out) biases
    with the true (unpadded) PyTorch layer widths."""
    B, D = x.shape
    f32 = jnp.float32

    # --- lane-align hidden widths with exact zero padding (numerically a no-op) ---
    w1 = jnp.zeros((D, LANE), f32).at[:, :100].set(params["w1"].astype(f32))
    b1 = jnp.zeros((1, LANE), f32).at[:, :100].set(params["b1"].astype(f32))
    w2 = jnp.zeros((LANE, LANE), f32).at[:100, :].set(params["w2"].astype(f32))
    b2 = params["b2"].astype(f32)                                   # (1, 128)
    w3 = jnp.zeros((LANE, LANE), f32).at[:, :64].set(params["w3"].astype(f32))
    b3 = jnp.zeros((1, LANE), f32).at[:, :64].set(params["b3"].astype(f32))
    w4 = jnp.zeros((LANE, 1), f32).at[:64, :].set(params["w4"].astype(f32))
    b4 = params["b4"].astype(f32)                                   # (1, 1)

    # --- batch tiling: big tiles for pipelining, but never pad a tiny batch up to 512 ---
    tile_b = min(tile_b, _round_up(B, 8))
    bp = _round_up(B, tile_b)
    xp = x if bp == B else jnp.pad(x, ((0, bp - B), (0, 0)))
    grid = (bp // tile_b,)

    def _resident(shape):
        # Weight / bias blocks: same block every grid step -> stays VMEM-resident.
        return pl.BlockSpec(shape, lambda i: (0, 0))

    out = pl.pallas_call(
        _disc_kernel,
        out_shape=jax.ShapeDtypeStruct((bp, 1), f32),
        grid_spec=pltpu.PrefetchScalarGridSpec(
            num_scalar_prefetch=0,
            grid=grid,
            in_specs=[
                pl.BlockSpec((tile_b, D), lambda i: (i, 0)),        # x: streamed per tile
                _resident((D, LANE)), _resident((1, LANE)),          # layer 1
                _resident((LANE, LANE)), _resident((1, LANE)),       # layer 2
                _resident((LANE, LANE)), _resident((1, LANE)),       # layer 3
                _resident((LANE, 1)), _resident((1, 1)),             # layer 4
            ],
            out_specs=pl.BlockSpec((tile_b, 1), lambda i: (i, 0)),
        ),
        compiler_params=pltpu.CompilerParams(
            dimension_semantics=("parallel",),                       # 2-TC sharding on v7x
        ),
    )(xp, w1, b1, w2, b2, w3, b3, w4, b4)
    return out[:B]


def init_params(key, input_dim):
    """Deterministic synthetic init; shapes mirror the nn.Linear layers of the module."""
    dims = [(input_dim, 100), (100, 128), (128, 64), (64, 1)]
    params = {}
    for i, (fin, fout) in enumerate(dims, start=1):
        key, kw, kb = jax.random.split(key, 3)
        scale = 1.0 / jnp.sqrt(jnp.float32(fin))
        params[f"w{i}"] = jax.random.uniform(
            kw, (fin, fout), jnp.float32, minval=-scale, maxval=scale)
        params[f"b{i}"] = jax.random.uniform(
            kb, (1, fout), jnp.float32, minval=-scale, maxval=scale)
    return params


def _reference_forward(x, p):
    h = jnp.maximum(x @ p["w1"] + p["b1"], 0.0)
    h = jnp.maximum(h @ p["w2"] + p["b2"], 0.0)
    h = jnp.maximum(h @ p["w3"] + p["b3"], 0.0)
    return jax.nn.sigmoid(h @ p["w4"] + p["b4"])


if __name__ == "__main__":
    key = jax.random.PRNGKey(0)
    key, kx = jax.random.split(key)
    batch, input_dim = 8, 16
    x = jax.random.normal(kx, (batch, input_dim), jnp.float32)
    params = init_params(key, input_dim)

    out = discriminator_forward(x, params)
    out = jax.block_until_ready(out)

    ref = _reference_forward(x, params)
    assert out.shape == (batch, 1), out.shape
    assert jnp.allclose(out, ref, atol=1e-5, rtol=1e-5), "mismatch vs reference"

    # Also exercise a batch that actually uses the grid + padding path.
    key, kx2 = jax.random.split(key)
    x2 = jax.random.normal(kx2, (1000, input_dim), jnp.float32)
    out2 = jax.block_until_ready(discriminator_forward(x2, params, tile_b=256))
    ref2 = _reference_forward(x2, params)
    assert out2.shape == (1000, 1)
    assert jnp.allclose(out2, ref2, atol=1e-5, rtol=1e-5), "mismatch vs reference (large batch)"

    print("KERNEL_OK")
</pallas_src>

<mosaic_0001>
module attributes {stable_mosaic.version = 11 : i64} {
  func.func @_disc_kernel(%arg0: i32, %arg1: memref<8x16xf32, #tpu.memory_space<vmem>>, %arg2: memref<16x128xf32, #tpu.memory_space<vmem>>, %arg3: memref<1x128xf32, #tpu.memory_space<vmem>>, %arg4: memref<128x128xf32, #tpu.memory_space<vmem>>, %arg5: memref<1x128xf32, #tpu.memory_space<vmem>>, %arg6: memref<128x128xf32, #tpu.memory_space<vmem>>, %arg7: memref<1x128xf32, #tpu.memory_space<vmem>>, %arg8: memref<128x1xf32, #tpu.memory_space<vmem>>, %arg9: memref<1x1xf32, #tpu.memory_space<vmem>>, %arg10: memref<8x1xf32, #tpu.memory_space<vmem>>) attributes {dimension_semantics = [#tpu.dimension_semantics<parallel>], iteration_bounds = array<i64: 1>, scalar_prefetch = 0 : i64, scratch_operands = 0 : i64, tpu.core_type = #tpu.core_type<tc>, window_params = [{transform_indices = @transform_0, window_bounds = array<i64: 8, 16>}, {pipeline_mode = #tpu.pipeline_mode<synchronous>, transform_indices = @transform_1, window_bounds = array<i64: 16, 128>}, {pipeline_mode = #tpu.pipeline_mode<synchronous>, transform_indices = @transform_2, window_bounds = array<i64: 1, 128>}, {pipeline_mode = #tpu.pipeline_mode<synchronous>, transform_indices = @transform_3, window_bounds = array<i64: 128, 128>}, {pipeline_mode = #tpu.pipeline_mode<synchronous>, transform_indices = @transform_4, window_bounds = array<i64: 1, 128>}, {pipeline_mode = #tpu.pipeline_mode<synchronous>, transform_indices = @transform_5, window_bounds = array<i64: 128, 128>}, {pipeline_mode = #tpu.pipeline_mode<synchronous>, transform_indices = @transform_6, window_bounds = array<i64: 1, 128>}, {pipeline_mode = #tpu.pipeline_mode<synchronous>, transform_indices = @transform_7, window_bounds = array<i64: 128, 1>}, {pipeline_mode = #tpu.pipeline_mode<synchronous>, transform_indices = @transform_8, window_bounds = array<i64: 1, 1>}, {transform_indices = @transform_9, window_bounds = array<i64: 8, 1>}]} {
    %c0 = arith.constant 0 : index
    %c0_0 = arith.constant 0 : index
    %0 = vector.load %arg1[%c0, %c0_0] : memref<8x16xf32, #tpu.memory_space<vmem>>, vector<8x16xf32>
    %c0_1 = arith.constant 0 : index
    %c0_2 = arith.constant 0 : index
    %1 = vector.load %arg2[%c0_1, %c0_2] : memref<16x128xf32, #tpu.memory_space<vmem>>, vector<16x128xf32>
    %cst = arith.constant dense<0.000000e+00> : vector<8x128xf32>
    %2 = tpu.matmul %0, %1, %cst {dimension_numbers = #tpu.dot_dimension_numbers<[1], [0], [0], [1], [0, 0, 1, 1], [], []>} : vector<8x16xf32>, vector<16x128xf32>, vector<8x128xf32> -> vector<8x128xf32>
    %c0_3 = arith.constant 0 : index
    %c0_4 = arith.constant 0 : index
    %3 = vector.load %arg3[%c0_3, %c0_4] : memref<1x128xf32, #tpu.memory_space<vmem>>, vector<1x128xf32>
    %4 = vector.broadcast %3 : vector<1x128xf32> to vector<8x128xf32>
    %5 = arith.addf %2, %4 : vector<8x128xf32>
    %cst_5 = arith.constant 0.000000e+00 : f32
    %6 = vector.broadcast %cst_5 : f32 to vector<8x128xf32>
    %7 = arith.maximumf %5, %6 : vector<8x128xf32>
    %c0_6 = arith.constant 0 : index
    %c0_7 = arith.constant 0 : index
    %8 = vector.load %arg4[%c0_6, %c0_7] : memref<128x128xf32, #tpu.memory_space<vmem>>, vector<128x128xf32>
    %cst_8 = arith.constant dense<0.000000e+00> : vector<8x128xf32>
    %9 = tpu.matmul %7, %8, %cst_8 {dimension_numbers = #tpu.dot_dimension_numbers<[1], [0], [0], [1], [0, 0, 1, 1], [], []>} : vector<8x128xf32>, vector<128x128xf32>, vector<8x128xf32> -> vector<8x128xf32>
    %c0_9 = arith.constant 0 : index
    %c0_10 = arith.constant 0 : index
    %10 = vector.load %arg5[%c0_9, %c0_10] : memref<1x128xf32, #tpu.memory_space<vmem>>, vector<1x128xf32>
    %11 = vector.broadcast %10 : vector<1x128xf32> to vector<8x128xf32>
    %12 = arith.addf %9, %11 : vector<8x128xf32>
    %cst_11 = arith.constant 0.000000e+00 : f32
    %13 = vector.broadcast %cst_11 : f32 to vector<8x128xf32>
    %14 = arith.maximumf %12, %13 : vector<8x128xf32>
    %c0_12 = arith.constant 0 : index
    %c0_13 = arith.constant 0 : index
    %15 = vector.load %arg6[%c0_12, %c0_13] : memref<128x128xf32, #tpu.memory_space<vmem>>, vector<128x128xf32>
    %cst_14 = arith.constant dense<0.000000e+00> : vector<8x128xf32>
    %16 = tpu.matmul %14, %15, %cst_14 {dimension_numbers = #tpu.dot_dimension_numbers<[1], [0], [0], [1], [0, 0, 1, 1], [], []>} : vector<8x128xf32>, vector<128x128xf32>, vector<8x128xf32> -> vector<8x128xf32>
    %c0_15 = arith.constant 0 : index
    %c0_16 = arith.constant 0 : index
    %17 = vector.load %arg7[%c0_15, %c0_16] : memref<1x128xf32, #tpu.memory_space<vmem>>, vector<1x128xf32>
    %18 = vector.broadcast %17 : vector<1x128xf32> to vector<8x128xf32>
    %19 = arith.addf %16, %18 : vector<8x128xf32>
    %cst_17 = arith.constant 0.000000e+00 : f32
    %20 = vector.broadcast %cst_17 : f32 to vector<8x128xf32>
    %21 = arith.maximumf %19, %20 : vector<8x128xf32>
    %c0_18 = arith.constant 0 : index
    %c0_19 = arith.constant 0 : index
    %22 = vector.load %arg8[%c0_18, %c0_19] : memref<128x1xf32, #tpu.memory_space<vmem>>, vector<128x1xf32>
    %cst_20 = arith.constant dense<0.000000e+00> : vector<8x1xf32>
    %23 = tpu.matmul %21, %22, %cst_20 {dimension_numbers = #tpu.dot_dimension_numbers<[1], [0], [0], [1], [0, 0, 1, 1], [], []>} : vector<8x128xf32>, vector<128x1xf32>, vector<8x1xf32> -> vector<8x1xf32>
    %c0_21 = arith.constant 0 : index
    %c0_22 = arith.constant 0 : index
    %24 = vector.load %arg9[%c0_21, %c0_22] : memref<1x1xf32, #tpu.memory_space<vmem>>, vector<1x1xf32>
    %25 = vector.broadcast %24 : vector<1x1xf32> to vector<8x1xf32>
    %26 = arith.addf %23, %25 : vector<8x1xf32>
    %cst_23 = arith.constant 0.000000e+00 : f32
    %27 = vector.broadcast %cst_23 : f32 to vector<8x1xf32>
    %28 = arith.subf %27, %26 : vector<8x1xf32>
    %29 = math.exp %28 : vector<8x1xf32>
    %cst_24 = arith.constant 1.000000e+00 : f32
    %30 = vector.broadcast %cst_24 : f32 to vector<8x1xf32>
    %31 = arith.addf %30, %29 : vector<8x1xf32>
    %32 = tpu.reciprocal %31 : vector<8x1xf32> -> vector<8x1xf32>
    %c0_25 = arith.constant 0 : index
    %c0_26 = arith.constant 0 : index
    %33 = vector.load %arg10[%c0_25, %c0_26] : memref<8x1xf32, #tpu.memory_space<vmem>>, vector<8x1xf32>
    tpu.vector_store %arg10[%c0_25, %c0_26], %32 {strides = array<i32>} : memref<8x1xf32, #tpu.memory_space<vmem>>, vector<8x1xf32>,
    return
  }
  func.func @transform_0(%arg0: i32) -> (i32, i32) {
    %c0_i32 = arith.constant 0 : i32
    %c0_i32_0 = arith.constant 0 : i32
    return %arg0, %c0_i32 : i32, i32
  }
  func.func @transform_1(%arg0: i32) -> (i32, i32) {
    %c0_i32 = arith.constant 0 : i32
    %c0_i32_0 = arith.constant 0 : i32
    %c0_i32_1 = arith.constant 0 : i32
    return %c0_i32, %c0_i32_0 : i32, i32
  }
  func.func @transform_2(%arg0: i32) -> (i32, i32) {
    %c0_i32 = arith.constant 0 : i32
    %c0_i32_0 = arith.constant 0 : i32
    %c0_i32_1 = arith.constant 0 : i32
    return %c0_i32, %c0_i32_0 : i32, i32
  }
  func.func @transform_3(%arg0: i32) -> (i32, i32) {
    %c0_i32 = arith.constant 0 : i32
    %c0_i32_0 = arith.constant 0 : i32
    %c0_i32_1 = arith.constant 0 : i32
    return %c0_i32, %c0_i32_0 : i32, i32
  }
  func.func @transform_4(%arg0: i32) -> (i32, i32) {
    %c0_i32 = arith.constant 0 : i32
    %c0_i32_0 = arith.constant 0 : i32
    %c0_i32_1 = arith.constant 0 : i32
    return %c0_i32, %c0_i32_0 : i32, i32
  }
  func.func @transform_5(%arg0: i32) -> (i32, i32) {
    %c0_i32 = arith.constant 0 : i32
    %c0_i32_0 = arith.constant 0 : i32
    %c0_i32_1 = arith.constant 0 : i32
    return %c0_i32, %c0_i32_0 : i32, i32
  }
  func.func @transform_6(%arg0: i32) -> (i32, i32) {
    %c0_i32 = arith.constant 0 : i32
    %c0_i32_0 = arith.constant 0 : i32
    %c0_i32_1 = arith.constant 0 : i32
    return %c0_i32, %c0_i32_0 : i32, i32
  }
  func.func @transform_7(%arg0: i32) -> (i32, i32) {
    %c0_i32 = arith.constant 0 : i32
    %c0_i32_0 = arith.constant 0 : i32
    %c0_i32_1 = arith.constant 0 : i32
    return %c0_i32, %c0_i32_0 : i32, i32
  }
  func.func @transform_8(%arg0: i32) -> (i32, i32) {
    %c0_i32 = arith.constant 0 : i32
    %c0_i32_0 = arith.constant 0 : i32
    %c0_i32_1 = arith.constant 0 : i32
    return %c0_i32, %c0_i32_0 : i32, i32
  }
  func.func @transform_9(%arg0: i32) -> (i32, i32) {
    %c0_i32 = arith.constant 0 : i32
    %c0_i32_0 = arith.constant 0 : i32
    return %arg0, %c0_i32 : i32, i32
  }
}

</mosaic_0001>

<bundles_post_ra>
// kernel: tpu_custom_call.1
= control target key start
LH: loop header
LB: loop body
LE: loop exit
PB: predicated region body
PF: predicated region fallthrough
CT: control target
= control target key end

     0   :  { %s1019_s0 = inlined_call_operand.hbm [shape: f32[8,16], index: 0, kind: input, shape index: {}]   ;;  %s1020_s1 = inlined_call_operand.vmem [shape: f32[16,128], index: 1, kind: input, shape index: {}]   ;;  %s1021_s2 = inlined_call_operand.hbm [shape: f32[1,128], index: 2, kind: input, shape index: {}]   ;;  %s1022_s3 = inlined_call_operand.vmem [shape: f32[128,128], index: 3, kind: input, shape index: {}]   ;;  %s1023_s4 = inlined_call_operand.vmem [shape: f32[1,128], index: 4, kind: input, shape index: {}]   ;;  %s1024_s5 = inlined_call_operand.hbm [shape: f32[128,128], index: 5, kind: input, shape index: {}]   ;;  %s1025_s6 = inlined_call_operand.vmem [shape: f32[1,128], index: 6, kind: input, shape index: {}]   ;;  %s1026_s7 = inlined_call_operand.vmem [shape: f32[128,1], index: 7, kind: input, shape index: {}]   ;;  %s1027_s8 = inlined_call_operand.<no memory space> [shape: f32[1,1], index: 8, kind: input, shape index: {}]   ;;  %s1028_s9 = inlined_call_operand.vmem [shape: f32[8,1], index: 9, kind: output, shape index: {}]  }
   0x1   :  { %v14_v0 = vstv %s1027_s8 }
   0x2   :  { %15 = vst [vmem:[#allocation2] sm:$0x1] %v14_v0 }
   0x3   :  { %16 = vsyncpa [#allocation4], 0 }
   0x4   :  { %17 = vsyncpa [#allocation6], 0  ;;  %s778_s11 = smov [#allocation5]   ;;  %s779_s13 = smov [#allocation3]  }
   0x5   :  { %s36_s12 = sshll.u32 %s778_s11, 4  ;;  %s24_s14 = sshll.u32 %s779_s13, 4  ;;  %s37_s12 = int_to_ptr.vmem [resolvable:$true] %s36_s12  ;;  %s25_s14 = int_to_ptr.vmem [resolvable:$true] %s24_s14 }
   0x6   :  { %s708_s17 = scalar_lea.hbm %s1021_s2, 16 }
   0x7   :  { %p709_p0 = scmp.ne.s32.totalorder %s1021_s2, %s708_s17  ;;  %p712_p1 = scmp.lt.u32.totalorder %s708_s17, %s1021_s2 }
   0x9   :  { %p714_p2 = pnand %p712_p1, %p709_p0 }
   0xb   :  { %717 = shalt.err (!%p714_p2)
}
   0xc   :  { %s718_s8 = scalar_lea.vmem %s37_s12, 16  ;;  %s722_s22 = scalar_lea.vmem %s37_s12, 32 }
   0xd   :  { %p719_p3 = scmp.ne.s32.totalorder %s37_s12, %s718_s8  ;;  %p723_p4 = scmp.lt.s32.totalorder %s37_s12, %s37_s12 }
   0xe   :  { %p724_p5 = scmp.lt.s32.totalorder %s722_s22, %s718_s8 }
  0x10   :  { %p725_p6 = por %p724_p5, %p723_p4 }
  0x12   :  { %p726_p7 = pnand %p725_p6, %p719_p3 }
  0x14   :  { %729 = shalt.err (!%p726_p7)
}
  0x15   :  { %39 = dma.hbm_to_vmem [thread:$0]  %s1021_s2, 16, %s37_s12, [#allocation6]  }
  0x16   :  { %s730_s27 = scalar_lea.hbm %s1019_s0, 128 }
  0x17   :  { %p731_p8 = scmp.ne.s32.totalorder %s1019_s0, %s730_s27  ;;  %p734_p9 = scmp.lt.u32.totalorder %s730_s27, %s1019_s0 }
  0x19   :  { %p736_p10 = pnand %p734_p9, %p731_p8 }
  0x1b   :  { %739 = shalt.err (!%p736_p10)
}
  0x1c   :  { %s740_s11 = scalar_lea.vmem %s25_s14, 128  ;;  %p745_p12 = scmp.lt.s32.totalorder %s25_s14, %s25_s14 }
  0x1d   :  { %p741_p11 = scmp.ne.s32.totalorder %s25_s14, %s740_s11  ;;  %p746_p13 = scmp.lt.s32.totalorder %s740_s11, %s740_s11 }
  0x1f   :  { %p747_p0 = por %p746_p13, %p745_p12 }
  0x21   :  { %p748_p1 = pnand %p747_p0, %p741_p11 }
  0x23   :  { %751 = shalt.err (!%p748_p1)
}
  0x24   :  { %27 = dma.hbm_to_vmem [thread:$0]  %s1019_s0, 128, %s25_s14, [#allocation4]  }
  0x25   :  { %s780_s13 = smov [#allocation7]   ;;  %s752_s18 = scalar_lea.hbm %s1024_s5, 2048 }
  0x26   :  { %s49_s15 = sshll.u32 %s780_s13, 4  ;;  %p753_p2 = scmp.ne.s32.totalorder %s1024_s5, %s752_s18  ;;  %s50_s15 = int_to_ptr.vmem [resolvable:$true] %s49_s15 }
  0x27   :  { %p756_p3 = scmp.lt.u32.totalorder %s752_s18, %s1024_s5 }
  0x29   :  { %p758_p4 = pnand %p756_p3, %p753_p2 }
  0x2b   :  { %761 = shalt.err (!%p758_p4)
}
  0x2c   :  { %s762_s22 = scalar_lea.vmem %s50_s15, 2048  ;;  %p767_p6 = scmp.lt.s32.totalorder %s50_s15, %s50_s15 }
  0x2d   :  { %p763_p5 = scmp.ne.s32.totalorder %s50_s15, %s762_s22  ;;  %p768_p7 = scmp.lt.s32.totalorder %s762_s22, %s762_s22 }
  0x2f   :  { %p769_p8 = por %p768_p7, %p767_p6 }
  0x31   :  { %p770_p9 = pnand %p769_p8, %p763_p5 }
  0x33   :  { %773 = shalt.err (!%p770_p9)
}
  0x34   :  { %s781_s0 = smov 128   ;;  %s782_s14 = smov 8  }
  0x35   :  { %55 = dma.hbm_to_vmem [thread:$0]  %s1024_s5, 2048, %s50_s15, [#allocation6], %s781_s0, %s781_s0, %s782_s14  }
  0x36   :  { %774 = dma.done.wait [#allocation4], 128  }
  0x37   :  { %775 = vsyncadd [#allocation4], 4294967168 }
  0x38   :  { %776 = dma.done.wait [#allocation6], 2064  }
  0x39   :  { %777 = vsyncadd [#allocation6], 4294965232  ;;  %v783_v1 = vmov 0.0|0.0   ;;  %vm784_vm0 = vmmov 0   ;;  %v785_v2 = vmov 0.0   ;;  %v72_v3 = vld [vmem:[%s1020_s1] sm:$0xff] }
  0x3a   :  { %621 = vmatprep.subr.bf16.mxu0 %v783_v1  ;;  %513 = vmatprep.mubr.msk.f32.mxu0 %vm784_vm0, %v785_v2  ;;  %v73_v4 = vld [vmem:[%s1020_s1 + $0x8] sm:$0xff]  ;;  %v156_v6 = vld [vmem:[%s1022_s3] sm:$0xff]  ;;  %v158_v8 = vld [vmem:[%s1022_s3 + $0x10] sm:$0xff]  ;;  %vm81_vm1 = vcmask 130048   ;;  %vm442_vm2 = vcmask 7168  }
  0x3b   :  { %624 = vmatprep.subr.bf16.mxu1 %v783_v1  ;;  %548 = vmatprep.mubr.msk.f32.mxu1 %vm784_vm0, %v785_v2  ;;  %v622_v5 = vpack.c.bf16 %v73_v4, %v72_v3  ;;  %v157_v7 = vld [vmem:[%s1022_s3 + $0x8] sm:$0xff]  ;;  %v159_v10 = vld [vmem:[%s1022_s3 + $0x18] sm:$0xff]  ;;  %v160_v13 = vld [vmem:[%s1022_s3 + $0x20] sm:$0xff] }
  0x3c   :  { %v625_v9 = vpack.c.bf16 %v157_v7, %v156_v6  ;;  %v71_v11 = vld [vmem:[#allocation3] sm:$0xff]  ;;  %v628_v12 = vpack.c.bf16 %v159_v10, %v158_v8  ;;  %v162_v16 = vld [vmem:[%s1022_s3 + $0x30] sm:$0xff]  ;;  %v163_v17 = vld [vmem:[%s1022_s3 + $0x38] sm:$0xff] }
  0x3d   :  { %623 = vmatpush3.bf16.msra.mxu0 %v622_v5  ;;  %v161_v14 = vld [vmem:[%s1022_s3 + $0x28] sm:$0xff]  ;;  %v634_v18 = vpack.c.bf16 %v163_v17, %v162_v16  ;;  %v164_v19 = vld [vmem:[%s1022_s3 + $0x40] sm:$0xff]  ;;  %v166_v22 = vld [vmem:[%s1022_s3 + $0x50] sm:$0xff] }
  0x3e   :  { %626 = vmatpush3.bf16.msra.mxu1 %v625_v9  ;;  %648 = vmatprep.subr.bf16.mxu0 %v783_v1  ;;  %v631_v15 = vpack.c.bf16 %v161_v14, %v160_v13  ;;  %v165_v20 = vld [vmem:[%s1022_s3 + $0x48] sm:$0xff]  ;;  %v167_v23 = vld [vmem:[%s1022_s3 + $0x58] sm:$0xff]  ;;  %v168_v25 = vld [vmem:[%s1022_s3 + $0x60] sm:$0xff] }
  0x3f   :  { %627 = vmatprep.subr.bf16.mxu1 %v783_v1  ;;  %v637_v21 = vpack.c.bf16 %v165_v20, %v164_v19  ;;  %v640_v24 = vpack.c.bf16 %v167_v23, %v166_v22  ;;  %v169_v26 = vld [vmem:[%s1022_s3 + $0x68] sm:$0xff]  ;;  %v170_v28 = vld [vmem:[%s1022_s3 + $0x70] sm:$0xff]  ;;  %v171_v29 = vld [vmem:[%s1022_s3 + $0x78] sm:$0xff] }
  0x40   :  { %514 = vmatmul.mubr.msk.f32.vlgmr.msra.gmra.mrb[0].mxu0 %vm81_vm1, %v71_v11  ;;  %v643_v27 = vpack.c.bf16 %v169_v26, %v168_v25  ;;  %v646_v30 = vpack.c.bf16 %v171_v29, %v170_v28  ;;  %v250_v31 = vld [vmem:[#allocation7] sm:$0xff]  ;;  %v251_v32 = vld [vmem:[#allocation7 + $0x8] sm:$0xff]  ;;  %v252_v33 = vld [vmem:[#allocation7 + $0x10] sm:$0xff] }
  0x41   :  { %583 = vmatprep.mubr.msk.f32.mxu0 %vm784_vm0, %v785_v2  ;;  %v649_v34 = vpack.c.bf16 %v251_v32, %v250_v31  ;;  %v253_v35 = vld [vmem:[#allocation7 + $0x18] sm:$0xff]  ;;  %v254_v37 = vld [vmem:[#allocation7 + $0x20] sm:$0xff]  ;;  %v255_v38 = vld [vmem:[#allocation7 + $0x28] sm:$0xff] }
  0x42   :  { %629 = vmatpush3.bf16.msra.mxu1 %v628_v12  ;;  %v652_v36 = vpack.c.bf16 %v253_v35, %v252_v33  ;;  %v655_v39 = vpack.c.bf16 %v255_v38, %v254_v37  ;;  %v256_v40 = vld [vmem:[#allocation7 + $0x30] sm:$0xff]  ;;  %v257_v41 = vld [vmem:[#allocation7 + $0x38] sm:$0xff]  ;;  %v258_v43 = vld [vmem:[#allocation7 + $0x40] sm:$0xff] }
  0x43   :  { %630 = vmatprep.subr.bf16.mxu1 %v783_v1  ;;  %650 = vmatpush3.bf16.msra.mxu0 %v649_v34  ;;  %v658_v42 = vpack.c.bf16 %v257_v41, %v256_v40  ;;  %v259_v44 = vld [vmem:[#allocation7 + $0x48] sm:$0xff]  ;;  %v260_v46 = vld [vmem:[#allocation7 + $0x50] sm:$0xff]  ;;  %v261_v47 = vld [vmem:[#allocation7 + $0x58] sm:$0xff] }
  0x44   :  { %651 = vmatprep.subr.bf16.mxu0 %v783_v1  ;;  %v661_v45 = vpack.c.bf16 %v259_v44, %v258_v43  ;;  %v664_v48 = vpack.c.bf16 %v261_v47, %v260_v46  ;;  %v262_v49 = vld [vmem:[#allocation7 + $0x60] sm:$0xff]  ;;  %v263_v50 = vld [vmem:[#allocation7 + $0x68] sm:$0xff]  ;;  %v450_v52 = vld [vmem:[#allocation5] ss:$0 sm:$0xff] }
  0x45   :  { %v667_v51 = vpack.c.bf16 %v263_v50, %v262_v49  ;;  %v264_v57 = vld [vmem:[#allocation7 + $0x70] sm:$0xff]  ;;  %v265_v58 = vld [vmem:[#allocation7 + $0x78] sm:$0xff]  ;;  %v346_v62 = vld [vmem:[%s1026_s7 + $0x10] sm:$0xff] }
  0x46   :  { %632 = vmatpush3.bf16.msra.mxu1 %v631_v15  ;;  %v670_v59 = vpack.c.bf16 %v265_v58, %v264_v57  ;;  %v344_v60 = vld [vmem:[%s1026_s7] sm:$0xff]  ;;  %v345_v61 = vld [vmem:[%s1026_s7 + $0x8] sm:$0xff]  ;;  %v347_v0 = vld [vmem:[%s1026_s7 + $0x18] sm:$0xff] }
  0x47   :  { %633 = vmatprep.subr.bf16.mxu1 %v783_v1  ;;  %653 = vmatpush3.bf16.msra.mxu0 %v652_v36  ;;  %v673_v63 = vpack.c.bf16 %v345_v61, %v344_v60  ;;  %v348_v3 = vld [vmem:[%s1026_s7 + $0x20] sm:$0xff]  ;;  %v349_v4 = vld [vmem:[%s1026_s7 + $0x28] sm:$0xff]  ;;  %v350_v6 = vld [vmem:[%s1026_s7 + $0x30] sm:$0xff] }
  0x48   :  { %654 = vmatprep.subr.bf16.mxu0 %v783_v1  ;;  %v679_v5 = vpack.c.bf16 %v349_v4, %v348_v3  ;;  %v351_v7 = vld [vmem:[%s1026_s7 + $0x38] sm:$0xff]  ;;  %v352_v9 = vld [vmem:[%s1026_s7 + $0x40] sm:$0xff]  ;;  %v353_v10 = vld [vmem:[%s1026_s7 + $0x48] sm:$0xff] }
  0x49   :  { %v682_v8 = vpack.c.bf16 %v351_v7, %v350_v6  ;;  %v685_v11 = vpack.c.bf16 %v353_v10, %v352_v9  ;;  %v354_v12 = vld [vmem:[%s1026_s7 + $0x50] sm:$0xff]  ;;  %v355_v13 = vld [vmem:[%s1026_s7 + $0x58] sm:$0xff]  ;;  %v356_v15 = vld [vmem:[%s1026_s7 + $0x60] sm:$0xff] }
  0x4a   :  { %635 = vmatpush3.bf16.msra.mxu1 %v634_v18  ;;  %v688_v14 = vpack.c.bf16 %v355_v13, %v354_v12  ;;  %v357_v16 = vld [vmem:[%s1026_s7 + $0x68] sm:$0xff]  ;;  %v452_v18 = vld [vmem:[%s1023_s4] ss:$0 sm:$0xff]  ;;  %v358_v23 = vld [vmem:[%s1026_s7 + $0x70] sm:$0xff] }
  0x4b   :  { %636 = vmatprep.subr.bf16.mxu1 %v783_v1  ;;  %656 = vmatpush3.bf16.msra.mxu0 %v655_v39  ;;  %v691_v17 = vpack.c.bf16 %v357_v16, %v356_v15 }
  0x4c   :  { %657 = vmatprep.subr.bf16.mxu0 %v783_v1 }
  0x4e   :  { %638 = vmatpush3.bf16.msra.mxu1 %v637_v21 }
  0x4f   :  { %639 = vmatprep.subr.bf16.mxu1 %v783_v1  ;;  %659 = vmatpush3.bf16.msra.mxu0 %v658_v42 }
  0x50   :  { %660 = vmatprep.subr.bf16.mxu0 %v783_v1 }
  0x52   :  { %641 = vmatpush3.bf16.msra.mxu1 %v640_v24  ;;  %v359_v24 = vld [vmem:[%s1026_s7 + $0x78] sm:$0xff] }
  0x53   :  { %642 = vmatprep.subr.bf16.mxu1 %v783_v1  ;;  %662 = vmatpush3.bf16.msra.mxu0 %v661_v45  ;;  %v694_v25 = vpack.c.bf16 %v359_v24, %v358_v23 }
  0x54   :  { %663 = vmatprep.subr.bf16.mxu0 %v783_v1 }
  0x56   :  { %644 = vmatpush3.bf16.msra.mxu1 %v643_v27 }
  0x57   :  { %645 = vmatprep.subr.bf16.mxu1 %v783_v1  ;;  %665 = vmatpush3.bf16.msra.mxu0 %v664_v48 }
  0x58   :  { %666 = vmatprep.subr.bf16.mxu0 %v783_v1 }
  0x5a   :  { %647 = vmatpush3.bf16.msra.mxu1 %v646_v30  ;;  %v454_v30 = vld [vmem:[#allocation2] ss:$0 sm:$0xff] }
  0x5b   :  { %672 = vmatprep.subr.bf16.mxu1 %v783_v1  ;;  %668 = vmatpush3.bf16.msra.mxu0 %v667_v51 }
  0x5c   :  { %669 = vmatprep.subr.bf16.mxu0 %v783_v1 }
  0x5f   :  { %671 = vmatpush3.bf16.msra.mxu0 %v670_v59 }
 0x113   :  { %v151_v53 = vpop.f32.mrb[0].mxu0 }
 0x114   :  { %v152_v54 = vadd.f32 %v450_v52, %v151_v53  ;;  %v515_v55 = vpop.f32.mrb[1].mxu0 }
 0x116   :  { %v155_v56 = vmax.f32 %v152_v54, 0.0 }
 0x118   :  { %549 = vmatmul.mubr.f32.vlgmr.msra.gmra.mrb[0].mxu1 %v155_v56 }
 0x119   :  { %618 = vmatprep.mubr.msk.f32.mxu1 %vm784_vm0, %v785_v2  ;;  %674 = vmatpush3.bf16.msra.mxu1 %v673_v63  ;;  %v676_v2 = vpack.c.bf16 %v347_v0, %v346_v62 }
 0x11a   :  { %675 = vmatprep.subr.bf16.mxu1 %v783_v1 }
 0x11d   :  { %677 = vmatpush3.bf16.msra.mxu1 %v676_v2 }
 0x11e   :  { %678 = vmatprep.subr.bf16.mxu1 %v783_v1 }
 0x121   :  { %680 = vmatpush3.bf16.msra.mxu1 %v679_v5 }
 0x122   :  { %681 = vmatprep.subr.bf16.mxu1 %v783_v1 }
 0x125   :  { %683 = vmatpush3.bf16.msra.mxu1 %v682_v8 }
 0x126   :  { %684 = vmatprep.subr.bf16.mxu1 %v783_v1 }
 0x129   :  { %686 = vmatpush3.bf16.msra.mxu1 %v685_v11 }
 0x12a   :  { %687 = vmatprep.subr.bf16.mxu1 %v783_v1 }
 0x12d   :  { %689 = vmatpush3.bf16.msra.mxu1 %v688_v14 }
 0x12e   :  { %690 = vmatprep.subr.bf16.mxu1 %v783_v1 }
 0x131   :  { %692 = vmatpush3.bf16.msra.mxu1 %v691_v17 }
 0x132   :  { %693 = vmatprep.subr.bf16.mxu1 %v783_v1  ;;  %v453_v1 = vld [vmem:[%s1025_s6] ss:$0 sm:$0xff] }
 0x135   :  { %695 = vmatpush3.bf16.msra.mxu1 %v694_v25 }
 0x1eb   :  { %v245_v19 = vpop.f32.mrb[0].mxu1 }
 0x1ec   :  { %v246_v20 = vadd.f32 %v452_v18, %v245_v19  ;;  %v550_v21 = vpop.f32.mrb[1].mxu1 }
 0x1ee   :  { %v249_v22 = vmax.f32 %v246_v20, 0.0 }
 0x1f0   :  { %584 = vmatmul.mubr.f32.vlgmr.msra.gmra.mrb[2].mxu0 %v249_v22 }
 0x2c3   :  { %v339_v26 = vpop.f32.mrb[2].mxu0 }
 0x2c4   :  { %v340_v27 = vadd.f32 %v453_v1, %v339_v26  ;;  %v585_v28 = vpop.f32.mrb[3].mxu0 }
 0x2c6   :  { %v343_v29 = vmax.f32 %v340_v27, 0.0 }
 0x2c8   :  { %619 = vmatmul.mubr.f32.vlgmr.msra.gmra.mrb[2].mxu1 %v343_v29 }
 0x39b   :  { %v433_v31 = vpop.f32.mrb[2].mxu1 }
 0x39c   :  { %v434_v32 = vadd.f32 %v454_v30, %v433_v31  ;;  %v620_v33 = vpop.f32.mrb[3].mxu1 }
 0x39e   :  { %v437_v34 = vsub.f32 0.0, %v434_v32 }
 0x3a0   :  { %v438_v35 = vmul.f32 1.442695, %v437_v34 }
 0x3a2   :  { %704 = vpow2.f32 %v438_v35 }
 0x3ac   :  { %v705_v36 = vpop.eup %704 }
 0x3ad   :  { %v440_v37 = vadd.f32 1.0, %v705_v36 }
 0x3af   :  { %706 = vrcp.f32 %v440_v37 }
 0x3b9   :  { %v707_v38 = vpop.eup %706 }
 0x3ba   :  { %443 = vst.msk [vmem:[%s1028_s9] sm:$0xff] %vm442_vm2, %v707_v38 }
 0x3bb   :  { %448 = vsyncpa [#allocation4], 1 }
 0x3bc   :  { %449 = vsyncpa [#allocation6], 1 }

</bundles_post_ra>
